<compile_context>
chip_gen: v5e
topology: v5e:2x2
jax: 0.10.0
libtpu: 0.0.40
codegen_flags: <defaults>
</compile_context>

<pallas_src>
import math
import functools

import jax
import jax.numpy as jnp
from jax.experimental import pallas as pl
from jax.experimental.pallas import tpu as pltpu


def _mha_kernel(q_ref, k_ref, v_ref, o_ref, *, num_heads, scale):
    # Each grid step handles `bn` batch rows: refs are (bn, T, D).
    bn, T, D = q_ref.shape
    dh = D // num_heads

    # Causal mask built once per grid step (hoisted out of row/head loops).
    row = jax.lax.broadcasted_iota(jnp.int32, (T, T), 0)
    col = jax.lax.broadcasted_iota(jnp.int32, (T, T), 1)
    causal = col <= row
    neg = jnp.float32(-1e30)  # finite "minus infinity"; diagonal never masked

    for b in range(bn):  # unrolled at trace time (bn is small)
        # Keep MXU operands in the input dtype; accumulate in f32.
        q = q_ref[b]
        k = k_ref[b]
        v = v_ref[b]
        for h in range(num_heads):  # heads are contiguous feature/lane slices
            lo, hi = h * dh, (h + 1) * dh
            qh = q[:, lo:hi]
            kh = k[:, lo:hi]
            vh = v[:, lo:hi]

            # QK^T without materializing a transpose: contract the last dims.
            s = jax.lax.dot_general(qh, kh, (((1,), (1,)), ((), ())),
                                    preferred_element_type=jnp.float32)
            # Scale folded into the mask select on the f32 scores.
            s = jnp.where(causal, s * scale, neg)

            # Numerically stable softmax, normalized AFTER the PV matmul so the
            # (T, T) probability matrix is never rescaled elementwise.
            m = jnp.max(s, axis=-1, keepdims=True)
            p = jnp.exp(s - m)
            denom = jnp.sum(p, axis=-1, keepdims=True)

            o_h = jnp.dot(p.astype(v_ref.dtype), vh,
                          preferred_element_type=jnp.float32)
            inv = pl.reciprocal(denom, approx=True)  # EUP slot, ~free
            # Static head slice of the output block (no outs list / concat).
            o_ref[b, :, lo:hi] = (o_h * inv).astype(o_ref.dtype)

    # TODO(synk): for T far beyond the module's (n_time_sequence + 1) mask
    # buffer, switch to a flash-style (tq, tk) tiling with online-softmax
    # scratch (grid (N, T/tq, T/tk), reduction axis last, "arbitrary") and
    # generation-specific tile sizes (v7x: 64 MiB VMEM, v6e: 128 MiB, v5e:
    # 16 MiB default scoped) instead of the dense (T, T) score matrix.


def _pick_block_rows(N, T, D, itemsize):
    """Largest divisor of N that (a) keeps q/k/v/out double-buffered blocks
    within a modest VMEM budget and (b) leaves >= 2 grid steps when N >= 2
    (so v7x's two TensorCores both get work)."""
    budget = 4 * 1024 * 1024
    per_row = T * D * itemsize * 8  # 4 tensors x 2 pipeline buffers
    max_rows = max(1, budget // max(per_row, 1))
    if N >= 2:
        max_rows = min(max_rows, max(1, (N + 1) // 2))
    bn = 1
    for d in range(1, N + 1):
        if N % d == 0 and d <= max_rows:
            bn = d
    return bn


def multi_head_attention(query, key, value, *, num_heads, n_time_sequence):
    """JAX/Pallas equivalent of MultiHeadAttention.forward."""
    N, T, D = query.shape
    assert D % num_heads == 0
    # Advisory only: the PyTorch module's mask buffer covers n_time_sequence+1
    # positions; the kernel derives the causal mask from T directly.
    assert T <= n_time_sequence + 1

    dh = D // num_heads
    scale = 1.0 / math.sqrt(dh)
    itemsize = jnp.dtype(query.dtype).itemsize

    bn = _pick_block_rows(N, T, D, itemsize)
    grid = (N // bn,)
    spec = pl.BlockSpec((bn, T, D), lambda i: (i, 0, 0))

    kernel = functools.partial(_mha_kernel, num_heads=num_heads, scale=scale)

    cost = pl.CostEstimate(
        flops=4 * N * num_heads * T * T * dh,        # QK^T + PV matmuls
        transcendentals=N * num_heads * T * T,       # exp
        bytes_accessed=4 * N * T * D * itemsize,     # q, k, v, out
    )

    return pl.pallas_call(
        kernel,
        out_shape=jax.ShapeDtypeStruct((N, T, D), query.dtype),
        grid=grid,
        in_specs=[spec, spec, spec],
        out_specs=spec,
        compiler_params=pltpu.CompilerParams(
            dimension_semantics=("parallel",),
        ),
        cost_estimate=cost,
    )(query, key, value)


def _reference(query, key, value, *, num_heads):
    """Pure-JAX reference mirroring the PyTorch forward exactly."""
    N, T, D = query.shape
    dh = D // num_heads
    q = query.reshape(N, T, num_heads, dh).transpose(0, 2, 1, 3)
    k = key.reshape(N, T, num_heads, dh).transpose(0, 2, 1, 3)
    v = value.reshape(N, T, num_heads, dh).transpose(0, 2, 1, 3)
    att = jnp.einsum("nhqd,nhkd->nhqk", q, k) * (1.0 / math.sqrt(dh))
    mask = jnp.tril(jnp.ones((T, T)))
    att = jnp.where(mask == 0, -jnp.inf, att)
    att = jax.nn.softmax(att, axis=-1)
    y = jnp.einsum("nhqk,nhkd->nhqd", att, v)
    return y.transpose(0, 2, 1, 3).reshape(N, T, D)


if __name__ == "__main__":
    # Module config (no learnable parameters in this module).
    hidden_dim = 32
    num_heads = 4
    n_time_sequence = 8

    # Small deterministic inputs consistent with forward(query, key, value).
    N, T, D = 2, 8, hidden_dim
    key0 = jax.random.PRNGKey(0)
    kq, kk, kv = jax.random.split(key0, 3)
    query = jax.random.normal(kq, (N, T, D), dtype=jnp.float32)
    key_in = jax.random.normal(kk, (N, T, D), dtype=jnp.float32)
    value = jax.random.normal(kv, (N, T, D), dtype=jnp.float32)

    out = multi_head_attention(query, key_in, value,
                               num_heads=num_heads,
                               n_time_sequence=n_time_sequence)
    out = jax.block_until_ready(out)

    ref = _reference(query, key_in, value, num_heads=num_heads)
    assert out.shape == (N, T, D)
    # Tolerance loosened slightly vs a pure-f32 path because the softmax
    # denominator uses the approximate (EUP) reciprocal.  Use approx=False in
    # the kernel if bit-level parity with the PyTorch reference matters.
    assert jnp.allclose(out, ref, atol=1e-2, rtol=1e-2), "mismatch vs reference"

    print("KERNEL_OK")
</pallas_src>

<mosaic_0001>
module attributes {stable_mosaic.version = 11 : i64} {
  func.func @_mha_kernel(%arg0: i32, %arg1: memref<1x8x32xf32, #tpu.memory_space<vmem>>, %arg2: memref<1x8x32xf32, #tpu.memory_space<vmem>>, %arg3: memref<1x8x32xf32, #tpu.memory_space<vmem>>, %arg4: memref<1x8x32xf32, #tpu.memory_space<vmem>>) attributes {dimension_semantics = [#tpu.dimension_semantics<parallel>], iteration_bounds = array<i64: 2>, scalar_prefetch = 0 : i64, scratch_operands = 0 : i64, tpu.core_type = #tpu.core_type<tc>, window_params = [{transform_indices = @transform_0, window_bounds = array<i64: 1, 8, 32>}, {transform_indices = @transform_1, window_bounds = array<i64: 1, 8, 32>}, {transform_indices = @transform_2, window_bounds = array<i64: 1, 8, 32>}, {transform_indices = @transform_3, window_bounds = array<i64: 1, 8, 32>}]} {
    %0 = tpu.iota {dimensions = array<i32: 0>} : vector<8x8xi32>
    %1 = tpu.iota {dimensions = array<i32: 1>} : vector<8x8xi32>
    %2 = arith.cmpi sle, %1, %0 : vector<8x8xi32>
    %c0 = arith.constant 0 : index
    %c0_0 = arith.constant 0 : index
    %c0_1 = arith.constant 0 : index
    %3 = vector.load %arg1[%c0, %c0_0, %c0_1] : memref<1x8x32xf32, #tpu.memory_space<vmem>>, vector<1x8x32xf32>
    %4 = vector.shape_cast %3 : vector<1x8x32xf32> to vector<8x32xf32>
    %c0_2 = arith.constant 0 : index
    %c0_3 = arith.constant 0 : index
    %c0_4 = arith.constant 0 : index
    %5 = vector.load %arg2[%c0_2, %c0_3, %c0_4] : memref<1x8x32xf32, #tpu.memory_space<vmem>>, vector<1x8x32xf32>
    %6 = vector.shape_cast %5 : vector<1x8x32xf32> to vector<8x32xf32>
    %c0_5 = arith.constant 0 : index
    %c0_6 = arith.constant 0 : index
    %c0_7 = arith.constant 0 : index
    %7 = vector.load %arg3[%c0_5, %c0_6, %c0_7] : memref<1x8x32xf32, #tpu.memory_space<vmem>>, vector<1x8x32xf32>
    %8 = vector.shape_cast %7 : vector<1x8x32xf32> to vector<8x32xf32>
    %9 = vector.extract_strided_slice %4 {offsets = [0, 0], sizes = [8, 8], strides = [1, 1]} : vector<8x32xf32> to vector<8x8xf32>
    %10 = vector.extract_strided_slice %6 {offsets = [0, 0], sizes = [8, 8], strides = [1, 1]} : vector<8x32xf32> to vector<8x8xf32>
    %11 = vector.extract_strided_slice %8 {offsets = [0, 0], sizes = [8, 8], strides = [1, 1]} : vector<8x32xf32> to vector<8x8xf32>
    %cst = arith.constant dense<0.000000e+00> : vector<8x8xf32>
    %12 = tpu.matmul %9, %10, %cst {dimension_numbers = #tpu.dot_dimension_numbers<[1], [1], [0], [0], [0, 0, 1, 0], [], []>} : vector<8x8xf32>, vector<8x8xf32>, vector<8x8xf32> -> vector<8x8xf32>
    %cst_8 = arith.constant 0.353553385 : f32
    %13 = vector.broadcast %cst_8 : f32 to vector<8x8xf32>
    %14 = arith.mulf %12, %13 : vector<8x8xf32>
    %cst_9 = arith.constant -1.000000e+30 : f32
    %15 = vector.broadcast %cst_9 : f32 to vector<8x8xf32>
    %16 = arith.select %2, %14, %15 : vector<8x8xi1>, vector<8x8xf32>
    %cst_10 = arith.constant dense<0xFF800000> : vector<8xf32>
    %17 = vector.multi_reduction <maximumf>, %16, %cst_10 [1] : vector<8x8xf32> to vector<8xf32>
    %18 = vector.shape_cast %17 : vector<8xf32> to vector<8x1xf32>
    %19 = vector.broadcast %18 : vector<8x1xf32> to vector<8x8xf32>
    %20 = arith.subf %16, %19 : vector<8x8xf32>
    %21 = math.exp %20 : vector<8x8xf32>
    %cst_11 = arith.constant dense<0.000000e+00> : vector<8xf32>
    %22 = vector.multi_reduction <add>, %21, %cst_11 [1] : vector<8x8xf32> to vector<8xf32>
    %23 = vector.shape_cast %22 : vector<8xf32> to vector<8x1xf32>
    %cst_12 = arith.constant dense<0.000000e+00> : vector<8x8xf32>
    %24 = tpu.matmul %21, %11, %cst_12 {dimension_numbers = #tpu.dot_dimension_numbers<[1], [0], [0], [1], [0, 0, 1, 1], [], []>} : vector<8x8xf32>, vector<8x8xf32>, vector<8x8xf32> -> vector<8x8xf32>
    %25 = tpu.reciprocal %23 {approx = true} : vector<8x1xf32> -> vector<8x1xf32>
    %26 = vector.broadcast %25 : vector<8x1xf32> to vector<8x8xf32>
    %27 = arith.mulf %24, %26 : vector<8x8xf32>
    %c0_13 = arith.constant 0 : index
    %c0_14 = arith.constant 0 : index
    %c0_15 = arith.constant 0 : index
    %28 = vector.load %arg4[%c0_13, %c0_14, %c0_15] : memref<1x8x32xf32, #tpu.memory_space<vmem>>, vector<1x8x8xf32>
    %29 = vector.shape_cast %28 : vector<1x8x8xf32> to vector<8x8xf32>
    %30 = vector.shape_cast %27 : vector<8x8xf32> to vector<1x8x8xf32>
    tpu.vector_store %arg4[%c0_13, %c0_14, %c0_15], %30 {strides = array<i32>} : memref<1x8x32xf32, #tpu.memory_space<vmem>>, vector<1x8x8xf32>,
    %31 = vector.extract_strided_slice %4 {offsets = [0, 8], sizes = [8, 8], strides = [1, 1]} : vector<8x32xf32> to vector<8x8xf32>
    %32 = vector.extract_strided_slice %6 {offsets = [0, 8], sizes = [8, 8], strides = [1, 1]} : vector<8x32xf32> to vector<8x8xf32>
    %33 = vector.extract_strided_slice %8 {offsets = [0, 8], sizes = [8, 8], strides = [1, 1]} : vector<8x32xf32> to vector<8x8xf32>
    %cst_16 = arith.constant dense<0.000000e+00> : vector<8x8xf32>
    %34 = tpu.matmul %31, %32, %cst_16 {dimension_numbers = #tpu.dot_dimension_numbers<[1], [1], [0], [0], [0, 0, 1, 0], [], []>} : vector<8x8xf32>, vector<8x8xf32>, vector<8x8xf32> -> vector<8x8xf32>
    %cst_17 = arith.constant 0.353553385 : f32
    %35 = vector.broadcast %cst_17 : f32 to vector<8x8xf32>
    %36 = arith.mulf %34, %35 : vector<8x8xf32>
    %cst_18 = arith.constant -1.000000e+30 : f32
    %37 = vector.broadcast %cst_18 : f32 to vector<8x8xf32>
    %38 = arith.select %2, %36, %37 : vector<8x8xi1>, vector<8x8xf32>
    %cst_19 = arith.constant dense<0xFF800000> : vector<8xf32>
    %39 = vector.multi_reduction <maximumf>, %38, %cst_19 [1] : vector<8x8xf32> to vector<8xf32>
    %40 = vector.shape_cast %39 : vector<8xf32> to vector<8x1xf32>
    %41 = vector.broadcast %40 : vector<8x1xf32> to vector<8x8xf32>
    %42 = arith.subf %38, %41 : vector<8x8xf32>
    %43 = math.exp %42 : vector<8x8xf32>
    %cst_20 = arith.constant dense<0.000000e+00> : vector<8xf32>
    %44 = vector.multi_reduction <add>, %43, %cst_20 [1] : vector<8x8xf32> to vector<8xf32>
    %45 = vector.shape_cast %44 : vector<8xf32> to vector<8x1xf32>
    %cst_21 = arith.constant dense<0.000000e+00> : vector<8x8xf32>
    %46 = tpu.matmul %43, %33, %cst_21 {dimension_numbers = #tpu.dot_dimension_numbers<[1], [0], [0], [1], [0, 0, 1, 1], [], []>} : vector<8x8xf32>, vector<8x8xf32>, vector<8x8xf32> -> vector<8x8xf32>
    %47 = tpu.reciprocal %45 {approx = true} : vector<8x1xf32> -> vector<8x1xf32>
    %48 = vector.broadcast %47 : vector<8x1xf32> to vector<8x8xf32>
    %49 = arith.mulf %46, %48 : vector<8x8xf32>
    %c0_22 = arith.constant 0 : index
    %c0_23 = arith.constant 0 : index
    %c8 = arith.constant 8 : index
    %50 = vector.load %arg4[%c0_22, %c0_23, %c8] : memref<1x8x32xf32, #tpu.memory_space<vmem>>, vector<1x8x8xf32>
    %51 = vector.shape_cast %50 : vector<1x8x8xf32> to vector<8x8xf32>
    %52 = vector.shape_cast %49 : vector<8x8xf32> to vector<1x8x8xf32>
    tpu.vector_store %arg4[%c0_22, %c0_23, %c8], %52 {strides = array<i32>} : memref<1x8x32xf32, #tpu.memory_space<vmem>>, vector<1x8x8xf32>,
    %53 = vector.extract_strided_slice %4 {offsets = [0, 16], sizes = [8, 8], strides = [1, 1]} : vector<8x32xf32> to vector<8x8xf32>
    %54 = vector.extract_strided_slice %6 {offsets = [0, 16], sizes = [8, 8], strides = [1, 1]} : vector<8x32xf32> to vector<8x8xf32>
    %55 = vector.extract_strided_slice %8 {offsets = [0, 16], sizes = [8, 8], strides = [1, 1]} : vector<8x32xf32> to vector<8x8xf32>
    %cst_24 = arith.constant dense<0.000000e+00> : vector<8x8xf32>
    %56 = tpu.matmul %53, %54, %cst_24 {dimension_numbers = #tpu.dot_dimension_numbers<[1], [1], [0], [0], [0, 0, 1, 0], [], []>} : vector<8x8xf32>, vector<8x8xf32>, vector<8x8xf32> -> vector<8x8xf32>
    %cst_25 = arith.constant 0.353553385 : f32
    %57 = vector.broadcast %cst_25 : f32 to vector<8x8xf32>
    %58 = arith.mulf %56, %57 : vector<8x8xf32>
    %cst_26 = arith.constant -1.000000e+30 : f32
    %59 = vector.broadcast %cst_26 : f32 to vector<8x8xf32>
    %60 = arith.select %2, %58, %59 : vector<8x8xi1>, vector<8x8xf32>
    %cst_27 = arith.constant dense<0xFF800000> : vector<8xf32>
    %61 = vector.multi_reduction <maximumf>, %60, %cst_27 [1] : vector<8x8xf32> to vector<8xf32>
    %62 = vector.shape_cast %61 : vector<8xf32> to vector<8x1xf32>
    %63 = vector.broadcast %62 : vector<8x1xf32> to vector<8x8xf32>
    %64 = arith.subf %60, %63 : vector<8x8xf32>
    %65 = math.exp %64 : vector<8x8xf32>
    %cst_28 = arith.constant dense<0.000000e+00> : vector<8xf32>
    %66 = vector.multi_reduction <add>, %65, %cst_28 [1] : vector<8x8xf32> to vector<8xf32>
    %67 = vector.shape_cast %66 : vector<8xf32> to vector<8x1xf32>
    %cst_29 = arith.constant dense<0.000000e+00> : vector<8x8xf32>
    %68 = tpu.matmul %65, %55, %cst_29 {dimension_numbers = #tpu.dot_dimension_numbers<[1], [0], [0], [1], [0, 0, 1, 1], [], []>} : vector<8x8xf32>, vector<8x8xf32>, vector<8x8xf32> -> vector<8x8xf32>
    %69 = tpu.reciprocal %67 {approx = true} : vector<8x1xf32> -> vector<8x1xf32>
    %70 = vector.broadcast %69 : vector<8x1xf32> to vector<8x8xf32>
    %71 = arith.mulf %68, %70 : vector<8x8xf32>
    %c0_30 = arith.constant 0 : index
    %c0_31 = arith.constant 0 : index
    %c16 = arith.constant 16 : index
    %72 = vector.load %arg4[%c0_30, %c0_31, %c16] : memref<1x8x32xf32, #tpu.memory_space<vmem>>, vector<1x8x8xf32>
    %73 = vector.shape_cast %72 : vector<1x8x8xf32> to vector<8x8xf32>
    %74 = vector.shape_cast %71 : vector<8x8xf32> to vector<1x8x8xf32>
    tpu.vector_store %arg4[%c0_30, %c0_31, %c16], %74 {strides = array<i32>} : memref<1x8x32xf32, #tpu.memory_space<vmem>>, vector<1x8x8xf32>,
    %75 = vector.extract_strided_slice %4 {offsets = [0, 24], sizes = [8, 8], strides = [1, 1]} : vector<8x32xf32> to vector<8x8xf32>
    %76 = vector.extract_strided_slice %6 {offsets = [0, 24], sizes = [8, 8], strides = [1, 1]} : vector<8x32xf32> to vector<8x8xf32>
    %77 = vector.extract_strided_slice %8 {offsets = [0, 24], sizes = [8, 8], strides = [1, 1]} : vector<8x32xf32> to vector<8x8xf32>
    %cst_32 = arith.constant dense<0.000000e+00> : vector<8x8xf32>
    %78 = tpu.matmul %75, %76, %cst_32 {dimension_numbers = #tpu.dot_dimension_numbers<[1], [1], [0], [0], [0, 0, 1, 0], [], []>} : vector<8x8xf32>, vector<8x8xf32>, vector<8x8xf32> -> vector<8x8xf32>
    %cst_33 = arith.constant 0.353553385 : f32
    %79 = vector.broadcast %cst_33 : f32 to vector<8x8xf32>
    %80 = arith.mulf %78, %79 : vector<8x8xf32>
    %cst_34 = arith.constant -1.000000e+30 : f32
    %81 = vector.broadcast %cst_34 : f32 to vector<8x8xf32>
    %82 = arith.select %2, %80, %81 : vector<8x8xi1>, vector<8x8xf32>
    %cst_35 = arith.constant dense<0xFF800000> : vector<8xf32>
    %83 = vector.multi_reduction <maximumf>, %82, %cst_35 [1] : vector<8x8xf32> to vector<8xf32>
    %84 = vector.shape_cast %83 : vector<8xf32> to vector<8x1xf32>
    %85 = vector.broadcast %84 : vector<8x1xf32> to vector<8x8xf32>
    %86 = arith.subf %82, %85 : vector<8x8xf32>
    %87 = math.exp %86 : vector<8x8xf32>
    %cst_36 = arith.constant dense<0.000000e+00> : vector<8xf32>
    %88 = vector.multi_reduction <add>, %87, %cst_36 [1] : vector<8x8xf32> to vector<8xf32>
    %89 = vector.shape_cast %88 : vector<8xf32> to vector<8x1xf32>
    %cst_37 = arith.constant dense<0.000000e+00> : vector<8x8xf32>
    %90 = tpu.matmul %87, %77, %cst_37 {dimension_numbers = #tpu.dot_dimension_numbers<[1], [0], [0], [1], [0, 0, 1, 1], [], []>} : vector<8x8xf32>, vector<8x8xf32>, vector<8x8xf32> -> vector<8x8xf32>
    %91 = tpu.reciprocal %89 {approx = true} : vector<8x1xf32> -> vector<8x1xf32>
    %92 = vector.broadcast %91 : vector<8x1xf32> to vector<8x8xf32>
    %93 = arith.mulf %90, %92 : vector<8x8xf32>
    %c0_38 = arith.constant 0 : index
    %c0_39 = arith.constant 0 : index
    %c24 = arith.constant 24 : index
    %94 = vector.load %arg4[%c0_38, %c0_39, %c24] : memref<1x8x32xf32, #tpu.memory_space<vmem>>, vector<1x8x8xf32>
    %95 = vector.shape_cast %94 : vector<1x8x8xf32> to vector<8x8xf32>
    %96 = vector.shape_cast %93 : vector<8x8xf32> to vector<1x8x8xf32>
    tpu.vector_store %arg4[%c0_38, %c0_39, %c24], %96 {strides = array<i32>} : memref<1x8x32xf32, #tpu.memory_space<vmem>>, vector<1x8x8xf32>,
    return
  }
  func.func @transform_0(%arg0: i32) -> (i32, i32, i32) {
    %c0_i32 = arith.constant 0 : i32
    %c0_i32_0 = arith.constant 0 : i32
    %c0_i32_1 = arith.constant 0 : i32
    return %arg0, %c0_i32, %c0_i32_0 : i32, i32, i32
  }
  func.func @transform_1(%arg0: i32) -> (i32, i32, i32) {
    %c0_i32 = arith.constant 0 : i32
    %c0_i32_0 = arith.constant 0 : i32
    %c0_i32_1 = arith.constant 0 : i32
    return %arg0, %c0_i32, %c0_i32_0 : i32, i32, i32
  }
  func.func @transform_2(%arg0: i32) -> (i32, i32, i32) {
    %c0_i32 = arith.constant 0 : i32
    %c0_i32_0 = arith.constant 0 : i32
    %c0_i32_1 = arith.constant 0 : i32
    return %arg0, %c0_i32, %c0_i32_0 : i32, i32, i32
  }
  func.func @transform_3(%arg0: i32) -> (i32, i32, i32) {
    %c0_i32 = arith.constant 0 : i32
    %c0_i32_0 = arith.constant 0 : i32
    %c0_i32_1 = arith.constant 0 : i32
    return %arg0, %c0_i32, %c0_i32_0 : i32, i32, i32
  }
}

</mosaic_0001>

<bundles_post_ra>
// kernel: tpu_custom_call.1
= control target key start
LH: loop header
LB: loop body
LE: loop exit
PB: predicated region body
PF: predicated region fallthrough
CT: control target
= control target key end

     0   :  { %s1200_s0 = inlined_call_operand.hbm [shape: f32[2,8,32], index: 0, kind: input, shape index: {}]   ;;  %s1201_s1 = inlined_call_operand.hbm [shape: f32[2,8,32], index: 1, kind: input, shape index: {}]   ;;  %s1202_s2 = inlined_call_operand.hbm [shape: f32[2,8,32], index: 2, kind: input, shape index: {}]   ;;  %s1203_s3 = inlined_call_operand.hbm [shape: f32[2,8,32], index: 3, kind: output, shape index: {}]  }
   0x1   :  { %1204 = sst [smem:[#allocation13_spill]] %s1201_s1 }
   0x2   :  { %8 = vsyncpa [#allocation3], 0 }
   0x3   :  { %10 = vsyncpa [#allocation3 + $0x1], 0 }
   0x4   :  { %11 = vsyncpa [#allocation6], 0 }
   0x5   :  { %13 = vsyncpa [#allocation6 + $0x1], 0 }
   0x6   :  { %14 = vsyncpa [#allocation4], 0 }
   0x7   :  { %16 = vsyncpa [#allocation4 + $0x1], 0  ;;  %s980_s12 = smov 0   ;;  %s982_s13 = smov 0  }
   0x8   :  { %s984_s14 = smov 0   ;;  %s986_s15 = smov 0  }
   0x9 LB: > { %s1001_s16 = sadd.s32 4294967295, %s952_s15   ;;  %s684_s17 = sadd.s32 4294967294, %s952_s15   ;;  %s952_s15 = sphi %s986_s15, %s1216_s15   ;;  %s948_s14 = sphi %s984_s14, %s1215_s14   ;;  %s944_s13 = sphi %s982_s13, %s1214_s13   ;;  %s940_s12 = sphi %s980_s12, %s1213_s12  }
   0xa   : > { %s1005_s18 = sadd.s32 1, %s952_s15   ;;  %s29_s19 = sadd.s32 1, %s948_s14 }
   0xb   : > { %s26_s20 = ssub.s32 %s952_s15, %s1005_s18  ;;  %p36_p0 = scmp.ne.s32.totalorder %s948_s14, %s944_s13 }
   0xc   : > { %p27_p1 = scmp.eq.s32.totalorder %s26_s20, 0  ;;  %p37_p2 = scmp.eq.s32.totalorder %s952_s15, 0 }
   0xd   : > { %p42_p3 = scmp.ne.s32.totalorder %s944_s13, %s940_s12  ;;  %p43_p4 = scmp.eq.s32.totalorder %s1001_s16, 0 }
   0xe   : > { %s1017_s21 = scalar_select %p27_p1, %s948_s14, %s29_s19  }
   0xf   : > { %p38_p5 = por %p37_p2, %p36_p0  ;;  %p1019_p6 = por %p43_p4, %p42_p3 }
  0x10   : > { %1205 = sst [smem:[#allocation12_spill]] %s1017_s21  ;;  %p118_p7 = scmp.eq.s32.totalorder %s1001_s16, 1 }
  0x11   : > { %p124_p8 = scmp.eq.s32.totalorder %s684_s17, 1  ;;  %p686_p9 = scmp.ge.s32.totalorder %s952_s15, 2 }
  0x12   : > { %p736_p10 = scmp.lt.s32.totalorder %s952_s15, 2  ;;  %p1026_p11 = por %p118_p7, %p36_p0 }
  0x13   : > { %p1030_p12 = por %p124_p8, %p42_p3  ;;  %s144_s25 = sand.u32 1, %s948_s14  }
  0x14   : > { %s1036_s26 = sshll.u32 %s952_s15, 3  ;;  %s1040_s27 = sshll.u32 %s144_s25, 3 }
  0x15   : > { %p1042_p13 = pnand %p736_p10, %p38_p5  ;;  %s163_s29 = sand.u32 1, %s952_s15  }
  0x16   : > { %s1210_s1 = sld [smem:[#allocation13_spill]]  ;;  %s167_s6 = scalar_lea.vmem [#allocation5], %s1040_s27 }
  0x17   : > { %s175_s7 = sshll.u32 %s167_s6, 4  ;;  %p693_p0 = scmp.ge.s32.totalorder %s952_s15, 1  ;;  %s176_s7 = int_to_ptr.vmem [resolvable:$true] %s175_s7 }
  0x18   : > { %s1053_s9 = scalar_lea.sflag [#allocation6], %s163_s29  ;;  %p796_p2 = pneg %p1042_p13 }
  0x1c   : > { %s171_s5 = scalar_lea.hbm %s1210_s1, %s1036_s26  ;;  %s799_s20 = scalar_lea.hbm %s1210_s1, 16 }
  0x1d   : > { %s173_s8 = sshll.u32 %s171_s5, 4  ;;  %s174_s8 = int_to_ptr.hbm [resolvable:$true] %s173_s8 }
  0x1e   : > { %s792_s10 = sshra.s32 %s174_s8, 4  ;;  %s793_s10 = int_to_ptr.hbm [resolvable:$true] %s792_s10 }
  0x1f   : > { %s794_s11 = scalar_lea.hbm %s793_s10, 8  ;;  %p800_p5 = scmp.lt.s32.totalorder %s793_s10, %s1210_s1 }
  0x20   : > { %p795_p1 = scmp.ne.s32.totalorder %s793_s10, %s794_s11  ;;  %p801_p7 = scmp.lt.s32.totalorder %s799_s20, %s794_s11 }
  0x22   : > { %p797_p3 = pnand %p796_p2, %p795_p1  ;;  %p802_p8 = por %p801_p7, %p800_p5 }
  0x24   : > { %p798_p4 = pneg %p797_p3 }
  0x26   : > { %p803_p10 = pnand %p802_p8, %p798_p4 }
  0x28   : > { %806 = shalt.err (!%p803_p10)
}
  0x29   : > { %728 = dma.hbm_to_vmem [thread:$0]  (!%p1042_p13), %s174_s8, 128, %s176_s7, %s1053_s9  }
  0x2a   : > { %p199_p1 = scmp.lt.s32.totalorder %s952_s15, 3  ;;  %s152_s6 = scalar_lea.hbm %s1200_s0, %s1036_s26 }
  0x2b   : > { %s154_s11 = sshll.u32 %s152_s6, 4  ;;  %s148_s17 = scalar_lea.vmem [#allocation2], %s1040_s27  ;;  %s155_s11 = int_to_ptr.hbm [resolvable:$true] %s154_s11 }
  0x2c   : > { %p1076_p3 = pnand %p693_p0, %p199_p1  ;;  %s156_s19 = sshll.u32 %s148_s17, 4  ;;  %s157_s19 = int_to_ptr.vmem [resolvable:$true] %s156_s19 }
  0x2d   : > { %s145_s20 = scalar_lea.sflag [#allocation3], %s144_s25  ;;  %s822_s30 = sshra.s32 %s155_s11, 4  ;;  %s823_s30 = int_to_ptr.hbm [resolvable:$true] %s822_s30 }
  0x2e   : > { %s824_s7 = scalar_lea.hbm %s823_s30, 8  ;;  %s829_s29 = scalar_lea.hbm %s1200_s0, 16 }
  0x2f   : > { %p825_p4 = scmp.ne.s32.totalorder %s823_s30, %s824_s7  ;;  %p830_p0 = scmp.lt.s32.totalorder %s823_s30, %s1200_s0 }
  0x30   : > { %p831_p8 = scmp.lt.s32.totalorder %s829_s29, %s824_s7 }
  0x31   : > { %p827_p5 = pnand %p825_p4, %p796_p2 }
  0x32   : > { %p832_p10 = por %p831_p8, %p830_p0 }
  0x33   : > { %p828_p7 = pneg %p827_p5 }
  0x35   : > { %p833_p1 = pnand %p832_p10, %p828_p7 }
  0x37   : > { %836 = shalt.err (!%p833_p1)
}
  0x38   : > { %725 = dma.hbm_to_vmem [thread:$0]  (!%p1042_p13), %s155_s11, 128, %s157_s19, %s145_s20  }
  0x39   : > { %s190_s1 = scalar_lea.hbm %s1202_s2, %s1036_s26  ;;  %s186_s8 = scalar_lea.vmem [#allocation7], %s1040_s27 }
  0x3a   : > { %s194_s4 = sshll.u32 %s186_s8, 4  ;;  %s192_s21 = sshll.u32 %s190_s1, 4  ;;  %s195_s4 = int_to_ptr.vmem [resolvable:$true] %s194_s4  ;;  %s193_s21 = int_to_ptr.hbm [resolvable:$true] %s192_s21 }
  0x3b   : > { %s852_s30 = sshra.s32 %s193_s21, 4  ;;  %s859_s11 = scalar_lea.hbm %s1202_s2, 16  ;;  %s853_s30 = int_to_ptr.hbm [resolvable:$true] %s852_s30 }
  0x3c   : > { %s854_s7 = scalar_lea.hbm %s853_s30, 8  ;;  %p860_p0 = scmp.lt.s32.totalorder %s853_s30, %s1202_s2 }
  0x3d   : > { %p855_p4 = scmp.ne.s32.totalorder %s853_s30, %s854_s7  ;;  %p861_p8 = scmp.lt.s32.totalorder %s859_s11, %s854_s7 }
  0x3f   : > { %p857_p5 = pnand %p855_p4, %p796_p2  ;;  %p862_p10 = por %p861_p8, %p860_p0 }
  0x41   : > { %p858_p7 = pneg %p857_p5 }
  0x43   : > { %p863_p1 = pnand %p862_p10, %p858_p7 }
  0x45   : > { %866 = shalt.err (!%p863_p1)
}
  0x46   : > { %731 = dma.hbm_to_vmem [thread:$0]  (!%p1042_p13), %s193_s21, 128, %s195_s4, %s1053_s9  }
  0x47   : > { %203 = sbr.rel (%p1076_p3) target bundleno = 876 (0x36c), region = 32  ;;  %s1114_s1 = sand.u32 (!%p1076_p3), 1, %s944_s13  }
  0x48   : > { %s1117_s26 = sshll.u32 (!%p1076_p3), %s1114_s1, 3  ;;  %s206_s27 = scalar_lea.sflag (!%p1076_p3), [#allocation3], %s1114_s1 }
  0x49   : > { %s209_s6 = scalar_lea.vmem (!%p1076_p3), [#allocation2], %s1117_s26 }
  0x4c   : > { %927 = dma.done.wait (%p1019_p6), %s206_s27, 128  }
  0x4d   : > { %929 = vsyncadd (%p1019_p6), %s206_s27, 4294967168  ;;  %s215_s21 = sand.u32 1, %s1001_s16   ;;  %s219_s9 = scalar_lea.vmem [#allocation5], %s1117_s26 }
  0x4e   : > { %s216_s28 = scalar_lea.sflag [#allocation6], %s215_s21 }
  0x4f   : > { %931 = dma.done.wait (%p1019_p6), %s216_s28, 256  }
  0x50   : > { %933 = vsyncadd (%p1019_p6), %s216_s28, 4294967040  ;;  %vm271_vm0 = vcmask 64512   ;;  %v269_v0 = vld [vmem:[%s219_s9] sm:$0xff]  ;;  %v268_v1 = vld [vmem:[%s209_s6] sm:$0xff]  ;;  %s954_s10 = smov 120   ;;  %s955_s25 = smov 104   ;;  %v263_v4 = vlaneseq }
  0x51   : > { %698 = vmatpush.xpose.msk.msra.mxu0 %vm271_vm0, %v269_v0  ;;  %335 = vrot.lane.b32.xlu1 %v268_v1, %s954_s10  ;;  %s956_s17 = smov 112   ;;  %s229_s22 = scalar_lea.vmem [#allocation7], %s1117_s26  ;;  %vm407_vm2 = vcmask 130112   ;;  %vm480_vm3 = vcmask 195712   ;;  %vm553_vm4 = vcmask 261312  }
  0x52   : > { %484 = vrot.lane.b32.xlu2 %v269_v0, %s955_s25  ;;  %v264_v6 = vshrl.u32 %v263_v4, 7  ;;  %v266_v7 = vand.u32 127, %v263_v4  ;;  %v270_v13 = vld [vmem:[%s229_s22] sm:$0xff]  ;;  %s957_s8 = smov 24   ;;  %s958_s4 = smov 8  }
  0x53   : > { %327 = vmatpush.msra.mxu1 %v270_v13  ;;  %s262_s30 = scalar_lea.vmem [#allocation8], %s1117_s26  ;;  %s959_s7 = smov 16  }
  0x54   : > { %699 = vmatmul.msk.f32.vlgmr.msra.gmra.mxu0 %vm271_vm0, %v268_v1  ;;  %vm267_vm1 = vcmp.le.s32.totalorder %v266_v7, %v264_v6  ;;  %s711_s29 = sshll.u32 %s1001_s16, 3  ;;  %s568_s20 = sshll.u32 %s262_s30, 4  ;;  %s569_s20 = int_to_ptr.vmem [resolvable:$true] %s568_s20 }
  0x55   : > { %s566_s19 = scalar_lea.hbm %s1203_s3, %s711_s29  ;;  %s556_s26 = scalar_lea.sflag [#allocation4], %s1114_s1 }
  0x56   : > { %s570_s27 = sshll.u32 %s566_s19, 4  ;;  %s902_s9 = scalar_lea.hbm %s1203_s3, 16  ;;  %s571_s27 = int_to_ptr.hbm [resolvable:$true] %s570_s27 }
  0x57   : > { %s896_s6 = sshra.s32 %s571_s27, 4  ;;  %s897_s6 = int_to_ptr.hbm [resolvable:$true] %s896_s6 }
  0x58   : > { %s898_s21 = scalar_lea.hbm %s897_s6, 8  ;;  %p903_p3 = scmp.lt.s32.totalorder %s897_s6, %s1203_s3 }
  0x59   : > { %411 = vrot.lane.b32.xlu1 %v269_v0, %s956_s17  ;;  %p899_p6 = scmp.ne.s32.totalorder %s897_s6, %s898_s21  ;;  %p904_p4 = scmp.lt.s32.totalorder %s902_s9, %s898_s21 }
  0x5a   : > { %409 = vrot.lane.b32.xlu2 %v268_v1, %s956_s17 }
  0x5b   : > { %p900_p13 = pnand %p899_p6, %p1026_p11  ;;  %p905_p5 = por %p904_p4, %p903_p3 }
  0x5d   : > { %p901_p2 = pneg %p900_p13 }
  0x5f   : > { %p906_p7 = pnand %p905_p5, %p901_p2 }
  0x61   : > { %482 = vrot.lane.b32.xlu1 %v268_v1, %s955_s25 }
  0xac   : > { %v485_v2 = vpop.permute.xlu2 %484 }
  0xad   : > { %707 = vmatpush.xpose.msk.msrb.mxu0 %vm271_vm0, %v485_v2 }
  0xb4   : > { %v410_v22 = vpop.permute.xlu2 %409 }
  0xc3   : > { %v336_v3 = vpop.permute.xlu1 %335 }
  0xcb   : > { %v412_v5 = vpop.permute.xlu1 %411 }
  0xcc   : > { %704 = vmatpush.xpose.msk.msrb.mxu1 %vm271_vm0, %v412_v5 }
  0xd1   : > { %v295_v8 = vpop.f32.mrf.mxu0 }
  0xd2   : > { %v298_v9 = vmul.f32 0.35355338, %v295_v8 }
  0xd3   : > { %v483_v10 = vpop.permute.xlu1 %482 }
  0xd4   : > { %v299_v11 = vsel %vm267_vm1, %v298_v9, -1e+30  ;;  %708 = vmatmul.msk.f32.vlgmr.msrb.gmra.mxu0 %vm271_vm0, %v483_v10 }
  0xd5   : > { %v300_v12 = vsel %vm271_vm0, %v299_v11, -inf }
  0xd6   : > { %301 = vmax.xlane.f32.xlu0 %v300_v12 }
  0xea   : > { %337 = vrot.lane.b32.xlu0 %v269_v0, %s954_s10 }
 0x149   : > { %v302_v14 = vpop.xlane.xlu0 %301 }
 0x14a   : > { %v303_v15 = vsub.f32 %v299_v11, %v302_v14 }
 0x14c   : > { %v304_v16 = vmul.f32 1.442695, %v303_v15 }
 0x14e   : > { %776 = vpow2.f32 %v304_v16 }
 0x151   : > { %v507_v17 = vpop.f32.mrf.mxu0 }
 0x152   : > { %v510_v18 = vmul.f32 0.35355338, %v507_v17 }
 0x154   : > { %v777_v19 = vpop.eup %776  ;;  %v511_v20 = vsel %vm267_vm1, %v510_v18, -1e+30 }
 0x155   : > { %700 = vmatmul.msk.f32.vlgmr.msra.gmra.mxu1 %vm271_vm0, %v777_v19  ;;  %v512_v21 = vsel %vm271_vm0, %v511_v20, -inf  ;;  %v306_v51 = vsel %vm271_vm0, %v777_v19, 0.0 }
 0x156   : > { %513 = vmax.xlane.f32.xlu0 %v512_v21 }
 0x15c   : > { %v338_v23 = vpop.permute.xlu0 %337 }
 0x15d   : > { %701 = vmatpush.xpose.msk.msra.mxu2 %vm271_vm0, %v338_v23  ;;  %705 = vmatmul.msk.f32.vlgmr.msrb.gmra.mxu1 %vm271_vm0, %v410_v22 }
 0x160   : > { %702 = vmatmul.msk.f32.vlgmr.msra.gmra.mxu2 %vm271_vm0, %v336_v3 }
 0x16a   : > { %521 = vrot.lane.b32.xlu0 %v270_v13, %s955_s25 }
 0x1c9   : > { %v514_v24 = vpop.xlane.xlu0 %513 }
 0x1ca   : > { %v515_v25 = vsub.f32 %v511_v20, %v514_v24 }
 0x1cc   : > { %v516_v26 = vmul.f32 1.442695, %v515_v25 }
 0x1ce   : > { %778 = vpow2.f32 %v516_v26 }
 0x1d2   : > { %v329_v27 = vpop.f32.mrf.mxu1 }
 0x1d4   : > { %v779_v29 = vpop.eup %778 }
 0x1d5   : > { %v518_v38 = vsel %vm271_vm0, %v779_v29, 0.0 }
 0x1da   : > { %v434_v28 = vpop.f32.mrf.mxu1 }
 0x1db   : > { %v437_v30 = vmul.f32 0.35355338, %v434_v28 }
 0x1dc   : > { %v522_v31 = vpop.permute.xlu0 %521 }
 0x1dd   : > { %v438_v32 = vsel %vm267_vm1, %v437_v30, -1e+30  ;;  %542 = vmatpush.msrb.mxu2 %v522_v31 }
 0x1de   : > { %v439_v33 = vsel %vm271_vm0, %v438_v32, -inf  ;;  %709 = vmatmul.msk.f32.vlgmr.msrb.gmra.mxu2 %vm271_vm0, %v779_v29 }
 0x1df   : > { %440 = vmax.xlane.f32.xlu1 %v439_v33 }
 0x1e3   : > { %v360_v34 = vpop.f32.mrf.mxu2 }
 0x1e4   : > { %v363_v35 = vmul.f32 0.35355338, %v360_v34 }
 0x1e6   : > { %v364_v36 = vsel %vm267_vm1, %v363_v35, -1e+30 }
 0x1e7   : > { %v365_v37 = vsel %vm271_vm0, %v364_v36, -inf }
 0x1e8   : > { %366 = vmax.xlane.f32.xlu2 %v365_v37 }
 0x1f8   : > { %448 = vrot.lane.b32.xlu1 %v270_v13, %s956_s17 }
 0x200   : > { %375 = vrot.lane.b32.xlu2 %v270_v13, %s954_s10 }
 0x222   : > { %519 = vadd.xlane.f32.xlu1 %v518_v38 }
 0x252   : > { %v441_v39 = vpop.xlane.xlu1 %440 }
 0x253   : > { %v442_v40 = vsub.f32 %v438_v32, %v441_v39 }
 0x255   : > { %v443_v41 = vmul.f32 1.442695, %v442_v40 }
 0x257   : > { %780 = vpow2.f32 %v443_v41 }
 0x25b   : > { %v367_v42 = vpop.xlane.xlu2 %366 }
 0x25c   : > { %v368_v43 = vsub.f32 %v364_v36, %v367_v42 }
 0x25d   : > { %v781_v44 = vpop.eup %780 }
 0x25e   : > { %v369_v45 = vmul.f32 1.442695, %v368_v43  ;;  %v445_v46 = vsel %vm271_vm0, %v781_v44, 0.0 }
 0x25f   : > { %446 = vadd.xlane.f32.xlu0 %v445_v46 }
 0x260   : > { %782 = vpow2.f32 %v369_v45 }
 0x261   : > { %v544_v54 = vpop.f32.mrf.mxu2 }
 0x263   : > { %v376_v47 = vpop.permute.xlu2 %375 }
 0x264   : > { %396 = vmatpush.msra.mxu3 %v376_v47 }
 0x266   : > { %v783_v48 = vpop.eup %782 }
 0x267   : > { %703 = vmatmul.msk.f32.vlgmr.msra.gmra.mxu3 %vm271_vm0, %v783_v48  ;;  %v371_v49 = vsel %vm271_vm0, %v783_v48, 0.0 }
 0x268   : > { %372 = vadd.xlane.f32.xlu2 %v371_v49 }
 0x26a   : > { %v449_v50 = vpop.permute.xlu1 %448 }
 0x26b   : > { %469 = vmatpush.msrb.mxu3 %v449_v50 }
 0x26f   : > { %706 = vmatmul.msk.f32.vlgmr.msrb.gmra.mxu3 %vm271_vm0, %v781_v44 }
 0x270   : > { %307 = vadd.xlane.f32.xlu2 %v306_v51 }
 0x295   : > { %v520_v52 = vpop.xlane.xlu1 %519 }
 0x296   : > { %784 = vrcp.f32 %v520_v52 }
 0x29c   : > { %v785_v53 = vpop.eup %784 }
 0x29d   : > { %v548_v55 = vmul.f32 %v785_v53, %v544_v54 }
 0x29f   : > { %550 = vrot.lane.b32.xlu1 %v548_v55, %s957_s8 }
 0x2d2   : > { %v447_v59 = vpop.xlane.xlu0 %446 }
 0x2db   : > { %v373_v56 = vpop.xlane.xlu2 %372 }
 0x2dc   : > { %786 = vrcp.f32 %v373_v56 }
 0x2e2   : > { %v787_v58 = vpop.eup %786 }
 0x2e3   : > { %v308_v57 = vpop.xlane.xlu2 %307 }
 0x2e4   : > { %788 = vrcp.f32 %v308_v57 }
 0x2e5   : > { %790 = vrcp.f32 %v447_v59 }
 0x2ea   : > { %v789_v60 = vpop.eup %788  ;;  %v398_v61 = vpop.f32.mrf.mxu3 }
 0x2eb   : > { %v333_v62 = vmul.f32 %v789_v60, %v329_v27  ;;  %v402_v63 = vmul.f32 %v787_v58, %v398_v61  ;;  %v791_v0 = vpop.eup %790 }
 0x2ed   : > { %404 = vrot.lane.b32.xlu2 %v402_v63, %s958_s4  ;;  %334 = vst.msk [vmem:[%s262_s30] sm:$0xff] %vm271_vm0, %v333_v62 }
 0x2f2   : > { %v471_v1 = vpop.f32.mrf.mxu3 }
 0x2f3   : > { %v475_v2 = vmul.f32 %v791_v0, %v471_v1 }
 0x2f5   : > { %477 = vrot.lane.b32.xlu0 %v475_v2, %s959_s7 }
 0x311   : > { %v551_v5 = vpop.permute.xlu1 %550 }
 0x347   : > { %v405_v3 = vpop.permute.xlu2 %404 }
 0x348   : > { %408 = vst.msk [vmem:[%s262_s30] sm:$0xff] %vm407_vm2, %v405_v3 }
 0x367   : > { %v478_v4 = vpop.permute.xlu0 %477 }
 0x368   : > { %481 = vst.msk [vmem:[%s262_s30] sm:$0xff] %vm480_vm3, %v478_v4 }
 0x369   : > { %554 = vst.msk [vmem:[%s262_s30] sm:$0xff] %vm553_vm4, %v551_v5 }
 0x36a   : > { %909 = shalt.err (!%p906_p7)
}
 0x36b   : > { %720 = dma.vmem_to_hbm [thread:$0]  (%p1026_p11), %s569_s20, 128, %s571_s27, %s556_s26  }
 0x36c PF: > { %s582_s1 = sand.u32 1, %s940_s12   ;;  %p733_p0 = pnand %p686_p9, %p1030_p12 }
 0x36d   : > { %s583_s17 = scalar_lea.sflag [#allocation4], %s582_s1 }
 0x36e   : > { %p734_p8 = pneg %p733_p0 }
 0x370   : > { %935 = dma.done.wait (%p734_p8), %s583_s17, 128  }
 0x371   : > { %937 = vsyncadd (%p734_p8), %s583_s17, 4294967168  ;;  %s1212_s22 = sld [smem:[#allocation12_spill]]  ;;  %p19_p10 = scmp.ge.s32.totalorder %s1005_s18, 4  }
 0x372   : > { %s1213_s12 = smov %s944_s13  ;;  %s1214_s13 = smov %s948_s14 }
 0x373   : > { %s1216_s15 = smov %s1005_s18  ;;  %21 = sbr.rel (!%p19_p10) target bundleno = 9 (0x9), region = 101 }
 0x377   : > { %s1215_s14 = smov %s1212_s22 }
 0x378   :  { %589 = vsyncpa [#allocation3], 1 }
 0x379   :  { %591 = vsyncpa [#allocation3 + $0x1], 1 }
 0x37a   :  { %592 = vsyncpa [#allocation6], 1 }
 0x37b   :  { %594 = vsyncpa [#allocation6 + $0x1], 1 }
 0x37c   :  { %595 = vsyncpa [#allocation4], 1 }
 0x37d   :  { %597 = vsyncpa [#allocation4 + $0x1], 1 }

</bundles_post_ra>
